<compile_context>
chip_gen: v7x
topology: tpu7x:2x2x1
jax: 0.10.0
libtpu: 0.0.40
codegen_flags: <defaults>
</compile_context>

<pallas_src>
import functools
import math

import jax
import jax.numpy as jnp
from jax import lax
from jax.experimental import pallas as pl
from jax.experimental.pallas import tpu as pltpu


def make_pe(max_len: int, d: int) -> jnp.ndarray:
    """Same construction as the torch module __init__ (sin half then cos half)."""
    position = jnp.arange(max_len, dtype=jnp.float32)[:, None]
    half = d // 2
    div_term = jnp.exp(jnp.arange(half, dtype=jnp.float32)
                       * -(math.log(10000.0) / (half - 1)))
    return jnp.concatenate(
        [jnp.sin(position * div_term), jnp.cos(position * div_term)], axis=1)


def _lfr_cmvn_pe_kernel(x_ref, cache_ref, scale_ref, bias0_ref, pe_ref,
                        rx_ref, rcache_ref, *, m, n, t_out, cache_len):
    """Fused LFR unfold + CMVN affine + PE add + cache concat.

    x_ref      : (T, D)               raw feature slab for this batch element
    cache_ref  : (cache_len, dm)      cache rows (dm = D*m)
    scale_ref  : (1, dm)              istd * sqrt(encoder_output_size)
    bias0_ref  : (1, dm)              mean * istd * sqrt(encoder_output_size)
    pe_ref     : (t_out, dm)          pe[offset+1 : offset+1+t_out]
    rx_ref     : (cache_len+t_out, dm)
    rcache_ref : (t_out, dm)
    """
    if cache_len > 0:
        rx_ref[:cache_len, :] = cache_ref[...]
    # LFR unfold: x_lfr[t, j*D + d] = x[t*n + j, d]
    # m strided sublane reads assembled along the lane axis.
    parts = [x_ref[pl.ds(j, t_out, stride=n), :] for j in range(m)]
    x_lfr = jnp.concatenate(parts, axis=-1)                     # (t_out, dm)
    # CMVN affine folded:  (x+mean)*istd*s + pe == x*(istd*s) + (mean*istd*s + pe)
    val = x_lfr * scale_ref[...] + (bias0_ref[...] + pe_ref[...])
    rcache_ref[...] = val
    rx_ref[cache_len:, :] = val


def make_lfr_cmvn_pe(mean, istd, pe, *, m=7, n=6, encoder_output_size=512):
    """One-time setup (mirrors the torch module's registered buffers).

    Returns forward(x, cache, offset) -> (r_x, r_x_len, r_cache, r_offset).
    """
    dm = int(mean.reshape(-1).shape[0])
    s = math.sqrt(encoder_output_size)
    scale_vec = (istd.reshape(-1).astype(jnp.float32) * s).reshape(1, dm)
    bias0_vec = (mean.reshape(-1).astype(jnp.float32)
                 * scale_vec.reshape(-1)).reshape(1, dm)
    pe = pe.astype(jnp.float32)

    def forward(x, cache, offset):
        B, T, D = x.shape
        assert D * m == dm, (D, m, dm)
        if T < m:
            # TODO(synk): streaming edge case T < m (t_out <= 0) not supported.
            raise ValueError(f"chunk too short for LFR: T={T} < m={m}")
        t_out = (T - m) // n + 1            # torch.unfold semantics
        cache_len = cache.shape[1]
        s_out = cache_len + t_out

        x = x.astype(jnp.float32)
        cache = cache.astype(jnp.float32)

        # torch: pos_emb = pe[offset + 1 : offset + 1 + t_out]
        # TODO(synk): lax.dynamic_slice clamps offset+1+t_out to max_len
        # (silently reuses the last rows) where torch would raise.
        pe_slice = lax.dynamic_slice_in_dim(pe, offset + 1, t_out, axis=0)

        kernel = functools.partial(_lfr_cmvn_pe_kernel,
                                   m=m, n=n, t_out=t_out, cache_len=cache_len)

        flops = 3 * B * t_out * dm
        bytes_accessed = 4 * (B * T * D + B * cache_len * dm + t_out * dm
                              + 2 * dm + B * s_out * dm + B * t_out * dm)

        r_x, r_cache = pl.pallas_call(
            kernel,
            out_shape=(jax.ShapeDtypeStruct((B, s_out, dm), jnp.float32),
                       jax.ShapeDtypeStruct((B, t_out, dm), jnp.float32)),
            grid=(B,),
            in_specs=[
                pl.BlockSpec((None, T, D), lambda b: (b, 0, 0)),           # x slab
                pl.BlockSpec((None, cache_len, dm), lambda b: (b, 0, 0)),  # cache
                pl.BlockSpec((1, dm), lambda b: (0, 0)),                   # scale  (resident)
                pl.BlockSpec((1, dm), lambda b: (0, 0)),                   # bias0  (resident)
                pl.BlockSpec((t_out, dm), lambda b: (0, 0)),               # pe     (resident)
            ],
            out_specs=(
                pl.BlockSpec((None, s_out, dm), lambda b: (b, 0, 0)),      # r_x
                pl.BlockSpec((None, t_out, dm), lambda b: (b, 0, 0)),      # r_cache
            ),
            compiler_params=pltpu.CompilerParams(
                dimension_semantics=("parallel",)),
            cost_estimate=pl.CostEstimate(flops=flops, transcendentals=0,
                                          bytes_accessed=bytes_accessed),
        )(x, cache, scale_vec, bias0_vec, pe_slice)

        r_offset = jnp.asarray(offset, jnp.int32) + t_out
        r_x_len = jnp.full((B, 1), s_out, dtype=jnp.int32)
        return r_x, r_x_len, r_cache, r_offset

    return forward


if __name__ == "__main__":
    # Small shapes consistent with the module's forward:
    #   feat_dim D=8, m=7 -> encoder_input_size = D*m = 56
    B, T, D = 2, 50, 8
    m, n = 7, 6
    dm = D * m                 # 56
    max_len = 64
    encoder_output_size = 32
    cache_len = 4
    offset = 3

    key = jax.random.PRNGKey(0)
    k1, k2, k3, k4 = jax.random.split(key, 4)
    x = jax.random.normal(k1, (B, T, D), dtype=jnp.float32)
    cache = jax.random.normal(k2, (B, cache_len, dm), dtype=jnp.float32)
    mean = jax.random.normal(k3, (dm,), dtype=jnp.float32)
    istd = jax.random.uniform(k4, (dm,), dtype=jnp.float32,
                              minval=0.5, maxval=1.5)
    pe = make_pe(max_len, dm)

    forward = make_lfr_cmvn_pe(mean, istd, pe, m=m, n=n,
                               encoder_output_size=encoder_output_size)
    r_x, r_x_len, r_cache, r_offset = forward(x, cache, offset)
    jax.block_until_ready((r_x, r_x_len, r_cache, r_offset))

    # Pure-JAX reference check (mirrors the torch forward exactly).
    t_out = (T - m) // n + 1
    idx = jnp.arange(t_out)[:, None] * n + jnp.arange(m)[None, :]
    x_lfr_ref = x[:, idx, :].reshape(B, t_out, dm)
    ref_rcache = ((x_lfr_ref + mean) * istd * math.sqrt(encoder_output_size)
                  + pe[offset + 1: offset + 1 + t_out])
    ref_rx = jnp.concatenate([cache, ref_rcache], axis=1)

    assert jnp.allclose(r_cache, ref_rcache, atol=1e-4, rtol=1e-5)
    assert jnp.allclose(r_x, ref_rx, atol=1e-4, rtol=1e-5)
    assert int(r_offset) == offset + t_out
    assert r_x_len.shape == (B, 1) and int(r_x_len[0, 0]) == cache_len + t_out

    print("KERNEL_OK")
</pallas_src>

<mosaic_0001>
module attributes {stable_mosaic.version = 11 : i64} {
  func.func @_lfr_cmvn_pe_kernel(%arg0: i32, %arg1: memref<1x50x8xf32, #tpu.memory_space<vmem>>, %arg2: memref<1x4x56xf32, #tpu.memory_space<vmem>>, %arg3: memref<1x56xf32, #tpu.memory_space<vmem>>, %arg4: memref<1x56xf32, #tpu.memory_space<vmem>>, %arg5: memref<8x56xf32, #tpu.memory_space<vmem>>, %arg6: memref<1x12x56xf32, #tpu.memory_space<vmem>>, %arg7: memref<1x8x56xf32, #tpu.memory_space<vmem>>) attributes {dimension_semantics = [#tpu.dimension_semantics<parallel>], iteration_bounds = array<i64: 2>, scalar_prefetch = 0 : i64, scratch_operands = 0 : i64, tpu.core_type = #tpu.core_type<tc>, window_params = [{transform_indices = @transform_0, window_bounds = array<i64: 1, 50, 8>}, {transform_indices = @transform_1, window_bounds = array<i64: 1, 4, 56>}, {pipeline_mode = #tpu.pipeline_mode<synchronous>, transform_indices = @transform_2, window_bounds = array<i64: 1, 56>}, {pipeline_mode = #tpu.pipeline_mode<synchronous>, transform_indices = @transform_3, window_bounds = array<i64: 1, 56>}, {pipeline_mode = #tpu.pipeline_mode<synchronous>, transform_indices = @transform_4, window_bounds = array<i64: 8, 56>}, {transform_indices = @transform_5, window_bounds = array<i64: 1, 12, 56>}, {transform_indices = @transform_6, window_bounds = array<i64: 1, 8, 56>}]} {
    %c0 = arith.constant 0 : index
    %c0_0 = arith.constant 0 : index
    %c0_1 = arith.constant 0 : index
    %0 = vector.load %arg2[%c0, %c0_0, %c0_1] : memref<1x4x56xf32, #tpu.memory_space<vmem>>, vector<1x4x56xf32>
    %1 = vector.shape_cast %0 : vector<1x4x56xf32> to vector<4x56xf32>
    %c0_2 = arith.constant 0 : index
    %c0_3 = arith.constant 0 : index
    %c0_4 = arith.constant 0 : index
    %2 = vector.load %arg6[%c0_2, %c0_3, %c0_4] : memref<1x12x56xf32, #tpu.memory_space<vmem>>, vector<1x4x56xf32>
    %3 = vector.shape_cast %2 : vector<1x4x56xf32> to vector<4x56xf32>
    %4 = vector.shape_cast %1 : vector<4x56xf32> to vector<1x4x56xf32>
    tpu.vector_store %arg6[%c0_2, %c0_3, %c0_4], %4 {strides = array<i32>} : memref<1x12x56xf32, #tpu.memory_space<vmem>>, vector<1x4x56xf32>,
    %c0_5 = arith.constant 0 : index
    %c0_6 = arith.constant 0 : index
    %c0_7 = arith.constant 0 : index
    %5 = tpu.strided_load %arg1[%c0_5, %c0_6, %c0_7] {strides = array<i32: 1, 6, 1>} : memref<1x50x8xf32, #tpu.memory_space<vmem>>, vector<1x8x8xf32>
    %6 = vector.shape_cast %5 : vector<1x8x8xf32> to vector<8x8xf32>
    %c0_8 = arith.constant 0 : index
    %c1 = arith.constant 1 : index
    %c0_9 = arith.constant 0 : index
    %7 = tpu.strided_load %arg1[%c0_8, %c1, %c0_9] {strides = array<i32: 1, 6, 1>} : memref<1x50x8xf32, #tpu.memory_space<vmem>>, vector<1x8x8xf32>
    %8 = vector.shape_cast %7 : vector<1x8x8xf32> to vector<8x8xf32>
    %c0_10 = arith.constant 0 : index
    %c2 = arith.constant 2 : index
    %c0_11 = arith.constant 0 : index
    %9 = tpu.strided_load %arg1[%c0_10, %c2, %c0_11] {strides = array<i32: 1, 6, 1>} : memref<1x50x8xf32, #tpu.memory_space<vmem>>, vector<1x8x8xf32>
    %10 = vector.shape_cast %9 : vector<1x8x8xf32> to vector<8x8xf32>
    %c0_12 = arith.constant 0 : index
    %c3 = arith.constant 3 : index
    %c0_13 = arith.constant 0 : index
    %11 = tpu.strided_load %arg1[%c0_12, %c3, %c0_13] {strides = array<i32: 1, 6, 1>} : memref<1x50x8xf32, #tpu.memory_space<vmem>>, vector<1x8x8xf32>
    %12 = vector.shape_cast %11 : vector<1x8x8xf32> to vector<8x8xf32>
    %c0_14 = arith.constant 0 : index
    %c4 = arith.constant 4 : index
    %c0_15 = arith.constant 0 : index
    %13 = tpu.strided_load %arg1[%c0_14, %c4, %c0_15] {strides = array<i32: 1, 6, 1>} : memref<1x50x8xf32, #tpu.memory_space<vmem>>, vector<1x8x8xf32>
    %14 = vector.shape_cast %13 : vector<1x8x8xf32> to vector<8x8xf32>
    %c0_16 = arith.constant 0 : index
    %c5 = arith.constant 5 : index
    %c0_17 = arith.constant 0 : index
    %15 = tpu.strided_load %arg1[%c0_16, %c5, %c0_17] {strides = array<i32: 1, 6, 1>} : memref<1x50x8xf32, #tpu.memory_space<vmem>>, vector<1x8x8xf32>
    %16 = vector.shape_cast %15 : vector<1x8x8xf32> to vector<8x8xf32>
    %c0_18 = arith.constant 0 : index
    %c6 = arith.constant 6 : index
    %c0_19 = arith.constant 0 : index
    %17 = tpu.strided_load %arg1[%c0_18, %c6, %c0_19] {strides = array<i32: 1, 6, 1>} : memref<1x50x8xf32, #tpu.memory_space<vmem>>, vector<1x8x8xf32>
    %18 = vector.shape_cast %17 : vector<1x8x8xf32> to vector<8x8xf32>
    %19 = tpu.concatenate %6, %8, %10, %12, %14, %16, %18 in 1 : vector<8x8xf32>, vector<8x8xf32>, vector<8x8xf32>, vector<8x8xf32>, vector<8x8xf32>, vector<8x8xf32>, vector<8x8xf32> -> vector<8x56xf32>
    %c0_20 = arith.constant 0 : index
    %c0_21 = arith.constant 0 : index
    %20 = vector.load %arg3[%c0_20, %c0_21] : memref<1x56xf32, #tpu.memory_space<vmem>>, vector<1x56xf32>
    %21 = vector.broadcast %20 : vector<1x56xf32> to vector<8x56xf32>
    %22 = arith.mulf %19, %21 : vector<8x56xf32>
    %c0_22 = arith.constant 0 : index
    %c0_23 = arith.constant 0 : index
    %23 = vector.load %arg4[%c0_22, %c0_23] : memref<1x56xf32, #tpu.memory_space<vmem>>, vector<1x56xf32>
    %c0_24 = arith.constant 0 : index
    %c0_25 = arith.constant 0 : index
    %24 = vector.load %arg5[%c0_24, %c0_25] : memref<8x56xf32, #tpu.memory_space<vmem>>, vector<8x56xf32>
    %25 = vector.broadcast %23 : vector<1x56xf32> to vector<8x56xf32>
    %26 = arith.addf %25, %24 : vector<8x56xf32>
    %27 = arith.addf %22, %26 : vector<8x56xf32>
    %c0_26 = arith.constant 0 : index
    %c0_27 = arith.constant 0 : index
    %c0_28 = arith.constant 0 : index
    %28 = vector.load %arg7[%c0_26, %c0_27, %c0_28] : memref<1x8x56xf32, #tpu.memory_space<vmem>>, vector<1x8x56xf32>
    %29 = vector.shape_cast %28 : vector<1x8x56xf32> to vector<8x56xf32>
    %30 = vector.shape_cast %27 : vector<8x56xf32> to vector<1x8x56xf32>
    tpu.vector_store %arg7[%c0_26, %c0_27, %c0_28], %30 {strides = array<i32>} : memref<1x8x56xf32, #tpu.memory_space<vmem>>, vector<1x8x56xf32>,
    %c0_29 = arith.constant 0 : index
    %c4_30 = arith.constant 4 : index
    %c0_31 = arith.constant 0 : index
    %31 = vector.load %arg6[%c0_29, %c4_30, %c0_31] : memref<1x12x56xf32, #tpu.memory_space<vmem>>, vector<1x8x56xf32>
    %32 = vector.shape_cast %31 : vector<1x8x56xf32> to vector<8x56xf32>
    %33 = vector.shape_cast %27 : vector<8x56xf32> to vector<1x8x56xf32>
    tpu.vector_store %arg6[%c0_29, %c4_30, %c0_31], %33 {strides = array<i32>} : memref<1x12x56xf32, #tpu.memory_space<vmem>>, vector<1x8x56xf32>,
    return
  }
  func.func @transform_0(%arg0: i32) -> (i32, i32, i32) {
    %c0_i32 = arith.constant 0 : i32
    %c0_i32_0 = arith.constant 0 : i32
    %c0_i32_1 = arith.constant 0 : i32
    return %arg0, %c0_i32, %c0_i32_0 : i32, i32, i32
  }
  func.func @transform_1(%arg0: i32) -> (i32, i32, i32) {
    %c0_i32 = arith.constant 0 : i32
    %c0_i32_0 = arith.constant 0 : i32
    %c0_i32_1 = arith.constant 0 : i32
    return %arg0, %c0_i32, %c0_i32_0 : i32, i32, i32
  }
  func.func @transform_2(%arg0: i32) -> (i32, i32) {
    %c0_i32 = arith.constant 0 : i32
    %c0_i32_0 = arith.constant 0 : i32
    %c0_i32_1 = arith.constant 0 : i32
    return %c0_i32, %c0_i32_0 : i32, i32
  }
  func.func @transform_3(%arg0: i32) -> (i32, i32) {
    %c0_i32 = arith.constant 0 : i32
    %c0_i32_0 = arith.constant 0 : i32
    %c0_i32_1 = arith.constant 0 : i32
    return %c0_i32, %c0_i32_0 : i32, i32
  }
  func.func @transform_4(%arg0: i32) -> (i32, i32) {
    %c0_i32 = arith.constant 0 : i32
    %c0_i32_0 = arith.constant 0 : i32
    %c0_i32_1 = arith.constant 0 : i32
    return %c0_i32, %c0_i32_0 : i32, i32
  }
  func.func @transform_5(%arg0: i32) -> (i32, i32, i32) {
    %c0_i32 = arith.constant 0 : i32
    %c0_i32_0 = arith.constant 0 : i32
    %c0_i32_1 = arith.constant 0 : i32
    return %arg0, %c0_i32, %c0_i32_0 : i32, i32, i32
  }
  func.func @transform_6(%arg0: i32) -> (i32, i32, i32) {
    %c0_i32 = arith.constant 0 : i32
    %c0_i32_0 = arith.constant 0 : i32
    %c0_i32_1 = arith.constant 0 : i32
    return %arg0, %c0_i32, %c0_i32_0 : i32, i32, i32
  }
}

</mosaic_0001>

<bundles_post_ra>
// kernel: tpu_custom_call.1
= control target key start
LH: loop header
LB: loop body
LE: loop exit
PB: predicated region body
PF: predicated region fallthrough
CT: control target
= control target key end

     0   :  { %12 = vsyncpa [#allocation3], 0  ;;  %s768_s0 = inlined_call_operand.vmem [shape: f32[2,50,8], index: 0, kind: input, shape index: {}]   ;;  %s769_s1 = inlined_call_operand.vmem [shape: f32[2,4,56], index: 1, kind: input, shape index: {}]   ;;  %s770_s2 = inlined_call_operand.vmem [shape: f32[1,56], index: 2, kind: input, shape index: {}]   ;;  %s771_s3 = inlined_call_operand.vmem [shape: f32[1,56], index: 3, kind: input, shape index: {}]   ;;  %s772_s4 = inlined_call_operand.vmem [shape: f32[8,56], index: 4, kind: input, shape index: {}]   ;;  %s773_s5 = inlined_call_operand.vmem [shape: f32[2,12,56], index: 5, kind: output, shape index: {0}]   ;;  %s774_s6 = inlined_call_operand.hbm [shape: f32[2,8,56], index: 6, kind: output, shape index: {1}]  }
   0x1   :  { %14 = vsyncpa [#allocation3 + $0x1], 0  ;;  %s645_s21 = smov 0   ;;  %s647_s22 = smov 0  }
   0x2   :  { %s649_s23 = smov 0   ;;  %s651_s24 = smov 0  }
   0x3 LB: > { %s666_s25 = sadd.s32 4294967295, %s601_s24   ;;  %s471_s26 = sadd.s32 4294967294, %s601_s24   ;;  %s601_s24 = sphi %s651_s24, %s780_s24   ;;  %s597_s23 = sphi %s649_s23, %s779_s23   ;;  %s593_s22 = sphi %s647_s22, %s778_s22   ;;  %s589_s21 = sphi %s645_s21, %s777_s21  }
   0x4   : > { %s670_s27 = sadd.s32 1, %s601_s24   ;;  %s168_s28 = sadd.s32 1, %s597_s23 }
   0x5   : > { %s165_s29 = ssub.s32 %s601_s24, %s670_s27  ;;  %p178_p0 = scmp.ne.s32.totalorder %s597_s23, %s593_s22 }
   0x6   : > { %p166_p1 = scmp.eq.s32.totalorder %s165_s29, 0  ;;  %p179_p2 = scmp.eq.s32.totalorder %s666_s25, 1 }
   0x7   : > { %p184_p3 = scmp.ne.s32.totalorder %s593_s22, %s589_s21  ;;  %p185_p4 = scmp.eq.s32.totalorder %s471_s26, 1 }
   0x8   : > { %s681_s30 = scalar_select %p166_p1, %s597_s23, %s168_s28  }
   0x9   : > { %p683_p5 = por %p179_p2, %p178_p0  ;;  %p687_p6 = por %p185_p4, %p184_p3 }
   0xa   : > { %p474_p7 = scmp.ge.s32.totalorder %s601_s24, 1  ;;  %p227_p8 = scmp.lt.s32.totalorder %s601_s24, 3 }
   0xc   : > { %p228_p9 = pnand %p474_p7, %p227_p8 }
   0xd   : > { %p266_p10 = scmp.lt.s32.totalorder (!%p228_p9), %s666_s25, 1  ;;  %s603_s14 = smov (!%p228_p9), 8   ;;  %vm281_vm0 = vcmask (!%p228_p9), 453632   ;;  %vm320_vm1 = vcmask (!%p228_p9), 64512   ;;  %vm322_vm2 = vcmask (!%p228_p9), 130048   ;;  %vm324_vm3 = vcmask (!%p228_p9), 195584  }
   0xe   : > { %231 = sbr.rel (%p228_p9) target bundleno = 170 (0xaa), region = 40  ;;  %s604_s15 = smov (!%p228_p9), 24   ;;  %vm326_vm4 = vcmask (!%p228_p9), 261120   ;;  %vm328_vm5 = vcmask (!%p228_p9), 326656   ;;  %v487_v15 = vld [vmem:[%s771_s3] ss:$0 sm:$0xff] (!%p228_p9) }
   0xf   : > { %s606_s11 = smov (!%p228_p9), 32   ;;  %s607_s12 = smov (!%p228_p9), 40   ;;  %v341_v16 = vld [vmem:[%s772_s4] sm:$0xff] (!%p228_p9)  ;;  %vm330_vm6 = vcmask (!%p228_p9), 392192   ;;  %vm350_vm7 = vcmask (!%p228_p9), 457728  }
  0x10   : > { %v486_v19 = vld [vmem:[%s770_s2] ss:$0 sm:$0xff] (!%p228_p9)  ;;  %v348_v22 = vadd.f32 (!%p228_p9), %v487_v15, %v341_v16  ;;  %s489_s26 = sshll.u32 (!%p228_p9), %s666_s25, 7 }
  0x15   : > { %s267_s9 = scalar_select %p266_p10, %s666_s25, 1 }
  0x17   : > { %s493_s10 = smul.u32 56, %s267_s9  ;;  %s477_s16 = sshll.u32 %s267_s9, 2 }
  0x18   : > { %s274_s19 = scalar_lea.vmem %s769_s1, %s477_s16  ;;  %s492_s20 = sshll.u32 %s267_s9, 4 }
  0x19   : > { %s270_s13 = scalar_lea.vmem %s768_s0, %s493_s10  ;;  %s704_s29 = scalar_lea.vmem %s773_s5, %s492_s20  ;;  %v280_v4 = vld [vmem:[%s274_s19] sm:$0xf] }
  0x1a   : > { %v480_v0 = vld [vmem:[%s270_s13 + $0x1] ss:$6 sm:$0xff]  ;;  %v481_v2 = vld [vmem:[%s270_s13 + $0x2] ss:$6 sm:$0xff]  ;;  %282 = vst.msk [vmem:[%s704_s29] sm:$0xf] %vm281_vm0, %v280_v4 }
  0x1b   : > { %v482_v1 = vld [vmem:[%s270_s13 + $0x3] ss:$6 sm:$0xff]  ;;  %297 = vrot.lane.b32.xlu0 %v480_v0, %s603_s14  ;;  %v483_v3 = vld [vmem:[%s270_s13 + $0x4] ss:$6 sm:$0xff]  ;;  %s605_s10 = smov 16   ;;  %s608_s9 = smov 48  }
  0x1c   : > { %305 = vrot.lane.b32.xlu1 %v482_v1, %s604_s15  ;;  %v484_v5 = vld [vmem:[%s270_s13 + $0x5] ss:$6 sm:$0xff]  ;;  %v485_v6 = vld [vmem:[%s270_s13 + $0x6] ss:$6 sm:$0xff]  ;;  %s263_s14 = sand.u32 1, %s593_s22  }
  0x1d   : > { %v283_v9 = vld [vmem:[%s270_s13] ss:$6 sm:$0xff]  ;;  %s475_s15 = sshll.u32 %s263_s14, 3  ;;  %s359_s16 = scalar_lea.sflag [#allocation3], %s263_s14 }
  0x1e   : > { %s265_s28 = scalar_lea.vmem [#allocation2], %s475_s15  ;;  %s609_s15 = smov [#allocation2]  }
  0x1f   : > { %301 = vrot.lane.b32.xlu0 %v481_v2, %s605_s10  ;;  %s375_s10 = sshll.u32 %s265_s28, 4  ;;  %s543_s17 = sshll.u32 %s609_s15, 4  ;;  %s725_s10 = int_to_ptr.vmem [resolvable:$true] %s375_s10  ;;  %s544_s17 = int_to_ptr.vmem [resolvable:$false] %s543_s17 }
  0x20   : > { %309 = vrot.lane.b32.xlu1 %v483_v3, %s606_s11  ;;  %s539_s25 = scalar_lea.vmem %s725_s10, 128  ;;  %s545_s18 = scalar_lea.vmem %s544_s17, 256 }
  0x21   : > { %p540_p11 = scmp.ne.s32.totalorder %s725_s10, %s539_s25  ;;  %p546_p0 = scmp.lt.s32.totalorder %s725_s10, %s544_s17 }
  0x22   : > { %p547_p1 = scmp.lt.s32.totalorder %s545_s18, %s539_s25 }
  0x23   : > { %313 = vrot.lane.b32.xlu0 %v484_v5, %s607_s12  ;;  %p541_p12 = pnand %p540_p11, %p683_p5 }
  0x24   : > { %317 = vrot.lane.b32.xlu1 %v485_v6, %s608_s9  ;;  %s723_s9 = scalar_lea.hbm %s774_s6, %s489_s26  ;;  %p548_p2 = por %p547_p1, %p546_p0 }
  0x25   : > { %p542_p13 = pneg %p541_p12 }
  0x27   : > { %p549_p3 = pnand %p548_p2, %p542_p13 }
  0x8d   : > { %v298_v7 = vpop.permute.xlu0 %297 }
  0x8e   : > { %v306_v8 = vpop.permute.xlu1 %305  ;;  %v321_v10 = vsel %vm320_vm1, %v283_v9, %v298_v7 }
  0x91   : > { %v302_v11 = vpop.permute.xlu0 %301 }
  0x92   : > { %v310_v12 = vpop.permute.xlu1 %309  ;;  %v323_v13 = vsel %vm322_vm2, %v321_v10, %v302_v11 }
  0x93   : > { %v325_v14 = vsel %vm324_vm3, %v323_v13, %v306_v8 }
  0x94   : > { %v327_v17 = vsel %vm326_vm4, %v325_v14, %v310_v12 }
  0x95   : > { %v314_v18 = vpop.permute.xlu0 %313 }
  0x96   : > { %v318_v20 = vpop.permute.xlu1 %317  ;;  %v329_v21 = vsel %vm328_vm5, %v327_v17, %v314_v18 }
  0x97   : > { %v331_v23 = vsel %vm330_vm6, %v329_v21, %v318_v20 }
  0x98   : > { %v339_v24 = vmul.f32 %v486_v19, %v331_v23 }
  0x9a   : > { %v349_v25 = vadd.f32 %v348_v22, %v339_v24 }
  0x9c   : > { %351 = vst.msk [vmem:[%s265_s28] sm:$0xff] %vm350_vm7, %v349_v25  ;;  %352 = vst.msk [vmem:[%s704_s29 + $0x4] sm:$0xff] %vm350_vm7, %v349_v25 }
  0x9d   : > { %552 = shalt.err (!%p549_p3)
}
  0x9e   : > { %s553_s29 = scalar_lea.hbm %s723_s9, 128  ;;  %s557_s13 = scalar_lea.hbm %s774_s6, 256 }
  0x9f   : > { %p554_p4 = scmp.ne.s32.totalorder %s723_s9, %s553_s29  ;;  %p558_p9 = scmp.lt.u32.totalorder %s723_s9, %s774_s6 }
  0xa0   : > { %p559_p10 = scmp.lt.u32.totalorder %s557_s13, %s553_s29  ;;  %p561_p12 = scmp.lt.u32.totalorder %s553_s29, %s723_s9 }
  0xa1   : > { %p555_p7 = pnand %p554_p4, %p683_p5 }
  0xa2   : > { %p560_p11 = por %p559_p10, %p558_p9 }
  0xa3   : > { %p556_p8 = pneg %p555_p7 }
  0xa4   : > { %p562_p13 = por %p561_p12, %p560_p11 }
  0xa6   : > { %p563_p0 = pnand %p562_p13, %p556_p8 }
  0xa8   : > { %566 = shalt.err (!%p563_p0)
}
  0xa9   : > { %494 = dma.vmem_to_hbm [thread:$0]  (%p683_p5), %s725_s10, 128, %s723_s9, %s359_s16  }
  0xaa PF: > { %p500_p1 = scmp.ge.s32.totalorder %s601_s24, 2  ;;  %s395_s28 = sand.u32 1, %s589_s21  }
  0xab   : > { %s396_s11 = scalar_lea.sflag [#allocation3], %s395_s28 }
  0xac   : > { %p497_p2 = pnand %p500_p1, %p687_p6 }
  0xae   : > { %584 = dma.done.wait (!%p497_p2), %s396_s11, 128  }
  0xaf   : > { %586 = vsyncadd (!%p497_p2), %s396_s11, 4294967168  ;;  %p17_p3 = scmp.ge.s32.totalorder %s670_s27, 4   ;;  %s777_s21 = smov %s593_s22 }
  0xb0   : > { %s778_s22 = smov %s597_s23  ;;  %s779_s23 = smov %s681_s30 }
  0xb1   : > { %s780_s24 = smov %s670_s27  ;;  %19 = sbr.rel (!%p17_p3) target bundleno = 3 (0x3), region = 96 }
  0xb8   :  { %401 = vsyncpa [#allocation3], 1 }
  0xb9   :  { %403 = vsyncpa [#allocation3 + $0x1], 1 }

</bundles_post_ra>
